<compile_context>
chip_gen: v5e
topology: v5e:2x2
jax: 0.10.0
libtpu: 0.0.40
codegen_flags: <defaults>
</compile_context>

<pallas_src>
import math
import jax
import jax.numpy as jnp
from jax.experimental import pallas as pl
from jax.experimental.pallas import tpu as pltpu

EPS = 1e-6


def sublayer_connection_kernel(
    x_ref, a2_ref, b2_ref, wqkv_ref, bqkv_ref, wo_ref, bo_ref, bias_ref, out_ref,
):
    x = x_ref[...]                                   # (S, D) f32
    S, D = x.shape
    H, dk, _ = wo_ref.shape

    # --- LayerNorm (torch-style: unbiased std, scale/(std+eps)), all f32 ---
    mean = jnp.mean(x, axis=-1, keepdims=True)
    diff = x - mean
    var = jnp.sum(diff * diff, axis=-1, keepdims=True) * (1.0 / (D - 1))
    inv_std = pl.reciprocal(jnp.sqrt(var) + EPS, approx=False)   # 1 recip / row
    xn = a2_ref[...] * diff * inv_std + b2_ref[...]

    # --- fused Q/K/V projection: bf16 operands, f32 accumulation on the MXU.
    #     1/sqrt(dk) is already folded into the Q slab of wqkv/bqkv host-side.
    qkv = jnp.dot(xn.astype(jnp.bfloat16), wqkv_ref[...],
                  preferred_element_type=jnp.float32) + bqkv_ref[...]
    q = qkv[:, :D]                                   # lane-tile aligned slices
    k = qkv[:, D:2 * D]
    v = qkv[:, 2 * D:]

    # --- multi-head attention; each head accumulates straight through its
    #     (dk, D) slab of W_o: no lane-axis concat, no live head_outs list ---
    acc = jnp.zeros((S, D), jnp.float32)
    for h in range(H):                               # static unroll over heads
        lo = h * dk
        qh = q[:, lo:lo + dk].astype(jnp.bfloat16)   # (S, dk)
        kh = k[:, lo:lo + dk].astype(jnp.bfloat16)
        vh = v[:, lo:lo + dk].astype(jnp.bfloat16)
        scores = jnp.einsum("qd,kd->qk", qh, kh,
                            preferred_element_type=jnp.float32)   # (S, S) f32
        scores = scores + bias_ref[h]                # additive mask (0 / -1e9)
        # Manual softmax: exp on the EUP, one approx reciprocal per row.
        m = jnp.max(scores, axis=-1, keepdims=True)
        e = jnp.exp(scores - m)
        p = e * pl.reciprocal(jnp.sum(e, axis=-1, keepdims=True), approx=True)
        # TODO(synk): attention-prob dropout omitted (eval / inference mode).
        ctx = jnp.dot(p.astype(jnp.bfloat16), vh,
                      preferred_element_type=jnp.float32)         # (S, dk)
        acc = acc + jnp.dot(ctx.astype(jnp.bfloat16), wo_ref[h],
                            preferred_element_type=jnp.float32)   # (S, D)

    # TODO(synk): sublayer-connection dropout omitted (eval / inference mode).
    out_ref[...] = x + acc + bo_ref[...]


def sublayer_connection(x, a2, b2, wq, bq, wk, bk, wv, bv, wo, bo, mask):
    B, S, D = x.shape
    H = mask.shape[0]
    dk = D // H

    # Host-side prep (perf):
    #  * fold 1/sqrt(dk) into the Q projection weight & bias
    #  * fuse Q/K/V weights into one (D, 3D) bf16 matmul operand (+ fused bias)
    #  * head-block W_o to (H, dk, D) so the kernel indexes the leading axis
    #  * convert the mask to an additive f32 bias (mask==0 -> -1e9, else 0)
    inv_sqrt_dk = 1.0 / math.sqrt(dk)
    wqkv = jnp.concatenate([wq * inv_sqrt_dk, wk, wv], axis=1).astype(jnp.bfloat16)
    bqkv = jnp.concatenate([bq * inv_sqrt_dk, bk, bv], axis=1).astype(jnp.float32)
    wo_heads = wo.reshape(H, dk, D).astype(jnp.bfloat16)                # (H, dk, D)
    bias = jnp.where(mask == 0, -1e9, 0.0).astype(jnp.float32)          # (H, S, S)

    const2 = lambda b: (0, 0)
    const3 = lambda b: (0, 0, 0)

    return pl.pallas_call(
        sublayer_connection_kernel,
        out_shape=jax.ShapeDtypeStruct((B, S, D), x.dtype),
        grid_spec=pltpu.PrefetchScalarGridSpec(
            num_scalar_prefetch=0,
            grid=(B,),
            # NOTE: each grid step feeds the MXU with M = S rows. For very
            # small S, flatten the LN/QKV phase over B*S rows; for very large
            # S, tile the KV axis flash-style.
            # TODO(synk): flash-style KV tiling (online softmax) for large S.
            in_specs=[
                pl.BlockSpec((pl.Squeezed(), S, D), lambda b: (b, 0, 0)),  # x
                pl.BlockSpec((1, D), const2),          # a2
                pl.BlockSpec((1, D), const2),          # b2
                pl.BlockSpec((D, 3 * D), const2),      # fused Wqkv (bf16)
                pl.BlockSpec((1, 3 * D), const2),      # fused bqkv (f32)
                pl.BlockSpec((H, dk, D), const3),      # head-blocked Wo (bf16)
                pl.BlockSpec((1, D), const2),          # bo
                pl.BlockSpec((H, S, S), const3),       # additive mask bias (f32)
            ],
            out_specs=pl.BlockSpec((pl.Squeezed(), S, D), lambda b: (b, 0, 0)),
        ),
        compiler_params=pltpu.CompilerParams(
            dimension_semantics=("parallel",),
            # Weights/bias/mask are grid-invariant; give the scheduler headroom
            # beyond the default scoped VMEM limit at realistic D/S.
            # TODO(synk): single-buffer grid-invariant operands
            # (pipeline_mode=pl.Buffered(1)) when tiling for v7x's 64 MiB VMEM.
            vmem_limit_bytes=32 * 1024 * 1024,
        ),
    )(x, a2, b2, wqkv, bqkv, wo_heads, bo, bias)


def reference(x, a2, b2, wq, bq, wk, bk, wv, bv, wo, bo, mask):
    """Plain-JAX reference mirroring the PyTorch module (eval mode) with the
    same precision policy as the kernel: bf16 matmul operands, f32 accumulation,
    f32 elementwise math."""
    B, S, D = x.shape
    H = mask.shape[0]
    dk = D // H
    bf16, f32 = jnp.bfloat16, jnp.float32

    mean = jnp.mean(x, -1, keepdims=True)
    std = jnp.sqrt(jnp.sum((x - mean) ** 2, -1, keepdims=True) / (D - 1))
    xn = a2 * (x - mean) / (std + EPS) + b2

    xn16 = xn.astype(bf16)
    q = jnp.dot(xn16, wq.astype(bf16), preferred_element_type=f32) + bq
    k = jnp.dot(xn16, wk.astype(bf16), preferred_element_type=f32) + bk
    v = jnp.dot(xn16, wv.astype(bf16), preferred_element_type=f32) + bv

    def split(t):  # (B, S, D) -> (B, H, S, dk)
        return t.reshape(B, S, H, dk).transpose(0, 2, 1, 3)

    q, k, v = split(q), split(k), split(v)
    scores = jnp.einsum("bhqd,bhkd->bhqk", q.astype(bf16), k.astype(bf16),
                        preferred_element_type=f32) / math.sqrt(dk)
    scores = jnp.where(mask[None] == 0, -1e9, scores)
    p = jax.nn.softmax(scores, axis=-1)
    ctx = jnp.einsum("bhqk,bhkd->bhqd", p.astype(bf16), v.astype(bf16),
                     preferred_element_type=f32)
    ctx = ctx.transpose(0, 2, 1, 3).reshape(B, S, D)
    return x + jnp.dot(ctx.astype(bf16), wo.astype(bf16),
                       preferred_element_type=f32) + bo


if __name__ == "__main__":
    # small shapes consistent with the module: batch=2, seq=8, d_model=128, heads=4
    B, S, D, H = 2, 8, 128, 4

    key = jax.random.PRNGKey(0)
    keys = jax.random.split(key, 10)

    x = jax.random.normal(keys[0], (B, S, D), dtype=jnp.float32)

    # LayerNorm params (torch init: ones / zeros)
    a2 = jnp.ones((1, D), dtype=jnp.float32)
    b2 = jnp.zeros((1, D), dtype=jnp.float32)

    # Linear params (PyTorch-style uniform(-1/sqrt(D), 1/sqrt(D))), stored (in, out).
    bound = 1.0 / math.sqrt(D)

    def lin(kw, kb):
        w = jax.random.uniform(kw, (D, D), jnp.float32, -bound, bound)
        b = jax.random.uniform(kb, (1, D), jnp.float32, -bound, bound)
        return w, b

    wq, bq = lin(keys[1], keys[2])
    wk, bk = lin(keys[3], keys[4])
    wv, bv = lin(keys[5], keys[6])
    wo, bo = lin(keys[7], keys[8])

    # Non-degenerate per-head mask (causal), shape (head, S, S); mask==0 -> -1e9,
    # matching the module's masked_fill(mask == 0, -1e9) semantics.
    mask = jnp.broadcast_to(jnp.tril(jnp.ones((S, S), jnp.float32)), (H, S, S))

    out = sublayer_connection(x, a2, b2, wq, bq, wk, bk, wv, bv, wo, bo, mask)
    out = jax.block_until_ready(out)

    ref = reference(x, a2, b2, wq, bq, wk, bk, wv, bv, wo, bo, mask)
    assert out.shape == (B, S, D)
    assert jnp.allclose(out, ref, atol=1e-2, rtol=1e-2), "mismatch vs reference"

    print("KERNEL_OK")
</pallas_src>

<mosaic_0001>
module attributes {stable_mosaic.version = 11 : i64} {
  func.func @sublayer_connection_kernel(%arg0: i32, %arg1: memref<1x8x128xf32, #tpu.memory_space<vmem>>, %arg2: memref<1x128xf32, #tpu.memory_space<vmem>>, %arg3: memref<1x128xf32, #tpu.memory_space<vmem>>, %arg4: memref<128x384xbf16, #tpu.memory_space<vmem>>, %arg5: memref<1x384xf32, #tpu.memory_space<vmem>>, %arg6: memref<4x32x128xbf16, #tpu.memory_space<vmem>>, %arg7: memref<1x128xf32, #tpu.memory_space<vmem>>, %arg8: memref<4x8x8xf32, #tpu.memory_space<vmem>>, %arg9: memref<1x8x128xf32, #tpu.memory_space<vmem>>) attributes {dimension_semantics = [#tpu.dimension_semantics<parallel>], iteration_bounds = array<i64: 2>, scalar_prefetch = 0 : i64, scratch_operands = 0 : i64, tpu.core_type = #tpu.core_type<tc>, window_params = [{transform_indices = @transform_0, window_bounds = array<i64: 1, 8, 128>}, {pipeline_mode = #tpu.pipeline_mode<synchronous>, transform_indices = @transform_1, window_bounds = array<i64: 1, 128>}, {pipeline_mode = #tpu.pipeline_mode<synchronous>, transform_indices = @transform_2, window_bounds = array<i64: 1, 128>}, {pipeline_mode = #tpu.pipeline_mode<synchronous>, transform_indices = @transform_3, window_bounds = array<i64: 128, 384>}, {pipeline_mode = #tpu.pipeline_mode<synchronous>, transform_indices = @transform_4, window_bounds = array<i64: 1, 384>}, {pipeline_mode = #tpu.pipeline_mode<synchronous>, transform_indices = @transform_5, window_bounds = array<i64: 4, 32, 128>}, {pipeline_mode = #tpu.pipeline_mode<synchronous>, transform_indices = @transform_6, window_bounds = array<i64: 1, 128>}, {pipeline_mode = #tpu.pipeline_mode<synchronous>, transform_indices = @transform_7, window_bounds = array<i64: 4, 8, 8>}, {transform_indices = @transform_8, window_bounds = array<i64: 1, 8, 128>}]} {
    %c0 = arith.constant 0 : index
    %c0_0 = arith.constant 0 : index
    %c0_1 = arith.constant 0 : index
    %0 = vector.load %arg1[%c0, %c0_0, %c0_1] : memref<1x8x128xf32, #tpu.memory_space<vmem>>, vector<1x8x128xf32>
    %1 = vector.shape_cast %0 : vector<1x8x128xf32> to vector<8x128xf32>
    %cst = arith.constant dense<0.000000e+00> : vector<8xf32>
    %2 = vector.multi_reduction <add>, %1, %cst [1] : vector<8x128xf32> to vector<8xf32>
    %3 = vector.shape_cast %2 : vector<8xf32> to vector<8x1xf32>
    %cst_2 = arith.constant 1.280000e+02 : f32
    %4 = vector.broadcast %cst_2 : f32 to vector<8x1xf32>
    %5 = arith.divf %3, %4 : vector<8x1xf32>
    %6 = vector.broadcast %5 : vector<8x1xf32> to vector<8x128xf32>
    %7 = arith.subf %1, %6 : vector<8x128xf32>
    %8 = arith.mulf %7, %7 : vector<8x128xf32>
    %cst_3 = arith.constant dense<0.000000e+00> : vector<8xf32>
    %9 = vector.multi_reduction <add>, %8, %cst_3 [1] : vector<8x128xf32> to vector<8xf32>
    %10 = vector.shape_cast %9 : vector<8xf32> to vector<8x1xf32>
    %cst_4 = arith.constant 0.00787401571 : f32
    %11 = vector.broadcast %cst_4 : f32 to vector<8x1xf32>
    %12 = arith.mulf %10, %11 : vector<8x1xf32>
    %13 = math.sqrt %12 : vector<8x1xf32>
    %cst_5 = arith.constant 9.99999997E-7 : f32
    %14 = vector.broadcast %cst_5 : f32 to vector<8x1xf32>
    %15 = arith.addf %13, %14 : vector<8x1xf32>
    %16 = tpu.reciprocal %15 : vector<8x1xf32> -> vector<8x1xf32>
    %c0_6 = arith.constant 0 : index
    %c0_7 = arith.constant 0 : index
    %17 = vector.load %arg2[%c0_6, %c0_7] : memref<1x128xf32, #tpu.memory_space<vmem>>, vector<1x128xf32>
    %18 = vector.broadcast %17 : vector<1x128xf32> to vector<8x128xf32>
    %19 = arith.mulf %18, %7 : vector<8x128xf32>
    %20 = vector.broadcast %16 : vector<8x1xf32> to vector<8x128xf32>
    %21 = arith.mulf %19, %20 : vector<8x128xf32>
    %c0_8 = arith.constant 0 : index
    %c0_9 = arith.constant 0 : index
    %22 = vector.load %arg3[%c0_8, %c0_9] : memref<1x128xf32, #tpu.memory_space<vmem>>, vector<1x128xf32>
    %23 = vector.broadcast %22 : vector<1x128xf32> to vector<8x128xf32>
    %24 = arith.addf %21, %23 : vector<8x128xf32>
    %25 = arith.truncf %24 : vector<8x128xf32> to vector<8x128xbf16>
    %c0_10 = arith.constant 0 : index
    %c0_11 = arith.constant 0 : index
    %26 = vector.load %arg4[%c0_10, %c0_11] : memref<128x384xbf16, #tpu.memory_space<vmem>>, vector<128x384xbf16>
    %cst_12 = arith.constant dense<0.000000e+00> : vector<8x384xf32>
    %27 = tpu.matmul %25, %26, %cst_12 {dimension_numbers = #tpu.dot_dimension_numbers<[1], [0], [0], [1], [0, 0, 1, 1], [], []>} : vector<8x128xbf16>, vector<128x384xbf16>, vector<8x384xf32> -> vector<8x384xf32>
    %c0_13 = arith.constant 0 : index
    %c0_14 = arith.constant 0 : index
    %28 = vector.load %arg5[%c0_13, %c0_14] : memref<1x384xf32, #tpu.memory_space<vmem>>, vector<1x384xf32>
    %29 = vector.broadcast %28 : vector<1x384xf32> to vector<8x384xf32>
    %30 = arith.addf %27, %29 : vector<8x384xf32>
    %31 = vector.extract_strided_slice %30 {offsets = [0, 0], sizes = [8, 128], strides = [1, 1]} : vector<8x384xf32> to vector<8x128xf32>
    %32 = vector.extract_strided_slice %30 {offsets = [0, 128], sizes = [8, 128], strides = [1, 1]} : vector<8x384xf32> to vector<8x128xf32>
    %33 = vector.extract_strided_slice %30 {offsets = [0, 256], sizes = [8, 128], strides = [1, 1]} : vector<8x384xf32> to vector<8x128xf32>
    %cst_15 = arith.constant 0.000000e+00 : f32
    %34 = vector.broadcast %cst_15 : f32 to vector<8x128xf32>
    %35 = vector.extract_strided_slice %31 {offsets = [0, 0], sizes = [8, 32], strides = [1, 1]} : vector<8x128xf32> to vector<8x32xf32>
    %36 = arith.truncf %35 : vector<8x32xf32> to vector<8x32xbf16>
    %37 = vector.extract_strided_slice %32 {offsets = [0, 0], sizes = [8, 32], strides = [1, 1]} : vector<8x128xf32> to vector<8x32xf32>
    %38 = arith.truncf %37 : vector<8x32xf32> to vector<8x32xbf16>
    %39 = vector.extract_strided_slice %33 {offsets = [0, 0], sizes = [8, 32], strides = [1, 1]} : vector<8x128xf32> to vector<8x32xf32>
    %40 = arith.truncf %39 : vector<8x32xf32> to vector<8x32xbf16>
    "tpu.trace_start"() <{level = 10 : i32, message = "qd,kd->qk"}> : () -> ()
    %cst_16 = arith.constant dense<0.000000e+00> : vector<8x8xf32>
    %41 = tpu.matmul %36, %38, %cst_16 {dimension_numbers = #tpu.dot_dimension_numbers<[1], [1], [0], [0], [0, 0, 1, 0], [], []>} : vector<8x32xbf16>, vector<8x32xbf16>, vector<8x8xf32> -> vector<8x8xf32>
    "tpu.trace_stop"() : () -> ()
    %c0_17 = arith.constant 0 : index
    %c0_18 = arith.constant 0 : index
    %c0_19 = arith.constant 0 : index
    %42 = vector.load %arg8[%c0_17, %c0_18, %c0_19] : memref<4x8x8xf32, #tpu.memory_space<vmem>>, vector<1x8x8xf32>
    %43 = vector.shape_cast %42 : vector<1x8x8xf32> to vector<8x8xf32>
    %44 = arith.addf %41, %43 : vector<8x8xf32>
    %cst_20 = arith.constant dense<0xFF800000> : vector<8xf32>
    %45 = vector.multi_reduction <maximumf>, %44, %cst_20 [1] : vector<8x8xf32> to vector<8xf32>
    %46 = vector.shape_cast %45 : vector<8xf32> to vector<8x1xf32>
    %47 = vector.broadcast %46 : vector<8x1xf32> to vector<8x8xf32>
    %48 = arith.subf %44, %47 : vector<8x8xf32>
    %49 = math.exp %48 : vector<8x8xf32>
    %cst_21 = arith.constant dense<0.000000e+00> : vector<8xf32>
    %50 = vector.multi_reduction <add>, %49, %cst_21 [1] : vector<8x8xf32> to vector<8xf32>
    %51 = vector.shape_cast %50 : vector<8xf32> to vector<8x1xf32>
    %52 = tpu.reciprocal %51 {approx = true} : vector<8x1xf32> -> vector<8x1xf32>
    %53 = vector.broadcast %52 : vector<8x1xf32> to vector<8x8xf32>
    %54 = arith.mulf %49, %53 : vector<8x8xf32>
    %55 = arith.truncf %54 : vector<8x8xf32> to vector<8x8xbf16>
    %cst_22 = arith.constant dense<0.000000e+00> : vector<8x32xf32>
    %56 = tpu.matmul %55, %40, %cst_22 {dimension_numbers = #tpu.dot_dimension_numbers<[1], [0], [0], [1], [0, 0, 1, 1], [], []>} : vector<8x8xbf16>, vector<8x32xbf16>, vector<8x32xf32> -> vector<8x32xf32>
    %57 = arith.truncf %56 : vector<8x32xf32> to vector<8x32xbf16>
    %c0_23 = arith.constant 0 : index
    %c0_24 = arith.constant 0 : index
    %c0_25 = arith.constant 0 : index
    %58 = vector.load %arg6[%c0_23, %c0_24, %c0_25] : memref<4x32x128xbf16, #tpu.memory_space<vmem>>, vector<1x32x128xbf16>
    %59 = vector.shape_cast %58 : vector<1x32x128xbf16> to vector<32x128xbf16>
    %cst_26 = arith.constant dense<0.000000e+00> : vector<8x128xf32>
    %60 = tpu.matmul %57, %59, %cst_26 {dimension_numbers = #tpu.dot_dimension_numbers<[1], [0], [0], [1], [0, 0, 1, 1], [], []>} : vector<8x32xbf16>, vector<32x128xbf16>, vector<8x128xf32> -> vector<8x128xf32>
    %61 = arith.addf %34, %60 : vector<8x128xf32>
    %62 = vector.extract_strided_slice %31 {offsets = [0, 32], sizes = [8, 32], strides = [1, 1]} : vector<8x128xf32> to vector<8x32xf32>
    %63 = arith.truncf %62 : vector<8x32xf32> to vector<8x32xbf16>
    %64 = vector.extract_strided_slice %32 {offsets = [0, 32], sizes = [8, 32], strides = [1, 1]} : vector<8x128xf32> to vector<8x32xf32>
    %65 = arith.truncf %64 : vector<8x32xf32> to vector<8x32xbf16>
    %66 = vector.extract_strided_slice %33 {offsets = [0, 32], sizes = [8, 32], strides = [1, 1]} : vector<8x128xf32> to vector<8x32xf32>
    %67 = arith.truncf %66 : vector<8x32xf32> to vector<8x32xbf16>
    "tpu.trace_start"() <{level = 10 : i32, message = "qd,kd->qk"}> : () -> ()
    %cst_27 = arith.constant dense<0.000000e+00> : vector<8x8xf32>
    %68 = tpu.matmul %63, %65, %cst_27 {dimension_numbers = #tpu.dot_dimension_numbers<[1], [1], [0], [0], [0, 0, 1, 0], [], []>} : vector<8x32xbf16>, vector<8x32xbf16>, vector<8x8xf32> -> vector<8x8xf32>
    "tpu.trace_stop"() : () -> ()
    %c1 = arith.constant 1 : index
    %c0_28 = arith.constant 0 : index
    %c0_29 = arith.constant 0 : index
    %69 = vector.load %arg8[%c1, %c0_28, %c0_29] : memref<4x8x8xf32, #tpu.memory_space<vmem>>, vector<1x8x8xf32>
    %70 = vector.shape_cast %69 : vector<1x8x8xf32> to vector<8x8xf32>
    %71 = arith.addf %68, %70 : vector<8x8xf32>
    %cst_30 = arith.constant dense<0xFF800000> : vector<8xf32>
    %72 = vector.multi_reduction <maximumf>, %71, %cst_30 [1] : vector<8x8xf32> to vector<8xf32>
    %73 = vector.shape_cast %72 : vector<8xf32> to vector<8x1xf32>
    %74 = vector.broadcast %73 : vector<8x1xf32> to vector<8x8xf32>
    %75 = arith.subf %71, %74 : vector<8x8xf32>
    %76 = math.exp %75 : vector<8x8xf32>
    %cst_31 = arith.constant dense<0.000000e+00> : vector<8xf32>
    %77 = vector.multi_reduction <add>, %76, %cst_31 [1] : vector<8x8xf32> to vector<8xf32>
    %78 = vector.shape_cast %77 : vector<8xf32> to vector<8x1xf32>
    %79 = tpu.reciprocal %78 {approx = true} : vector<8x1xf32> -> vector<8x1xf32>
    %80 = vector.broadcast %79 : vector<8x1xf32> to vector<8x8xf32>
    %81 = arith.mulf %76, %80 : vector<8x8xf32>
    %82 = arith.truncf %81 : vector<8x8xf32> to vector<8x8xbf16>
    %cst_32 = arith.constant dense<0.000000e+00> : vector<8x32xf32>
    %83 = tpu.matmul %82, %67, %cst_32 {dimension_numbers = #tpu.dot_dimension_numbers<[1], [0], [0], [1], [0, 0, 1, 1], [], []>} : vector<8x8xbf16>, vector<8x32xbf16>, vector<8x32xf32> -> vector<8x32xf32>
    %84 = arith.truncf %83 : vector<8x32xf32> to vector<8x32xbf16>
    %c1_33 = arith.constant 1 : index
    %c0_34 = arith.constant 0 : index
    %c0_35 = arith.constant 0 : index
    %85 = vector.load %arg6[%c1_33, %c0_34, %c0_35] : memref<4x32x128xbf16, #tpu.memory_space<vmem>>, vector<1x32x128xbf16>
    %86 = vector.shape_cast %85 : vector<1x32x128xbf16> to vector<32x128xbf16>
    %cst_36 = arith.constant dense<0.000000e+00> : vector<8x128xf32>
    %87 = tpu.matmul %84, %86, %cst_36 {dimension_numbers = #tpu.dot_dimension_numbers<[1], [0], [0], [1], [0, 0, 1, 1], [], []>} : vector<8x32xbf16>, vector<32x128xbf16>, vector<8x128xf32> -> vector<8x128xf32>
    %88 = arith.addf %61, %87 : vector<8x128xf32>
    %89 = vector.extract_strided_slice %31 {offsets = [0, 64], sizes = [8, 32], strides = [1, 1]} : vector<8x128xf32> to vector<8x32xf32>
    %90 = arith.truncf %89 : vector<8x32xf32> to vector<8x32xbf16>
    %91 = vector.extract_strided_slice %32 {offsets = [0, 64], sizes = [8, 32], strides = [1, 1]} : vector<8x128xf32> to vector<8x32xf32>
    %92 = arith.truncf %91 : vector<8x32xf32> to vector<8x32xbf16>
    %93 = vector.extract_strided_slice %33 {offsets = [0, 64], sizes = [8, 32], strides = [1, 1]} : vector<8x128xf32> to vector<8x32xf32>
    %94 = arith.truncf %93 : vector<8x32xf32> to vector<8x32xbf16>
    "tpu.trace_start"() <{level = 10 : i32, message = "qd,kd->qk"}> : () -> ()
    %cst_37 = arith.constant dense<0.000000e+00> : vector<8x8xf32>
    %95 = tpu.matmul %90, %92, %cst_37 {dimension_numbers = #tpu.dot_dimension_numbers<[1], [1], [0], [0], [0, 0, 1, 0], [], []>} : vector<8x32xbf16>, vector<8x32xbf16>, vector<8x8xf32> -> vector<8x8xf32>
    "tpu.trace_stop"() : () -> ()
    %c2 = arith.constant 2 : index
    %c0_38 = arith.constant 0 : index
    %c0_39 = arith.constant 0 : index
    %96 = vector.load %arg8[%c2, %c0_38, %c0_39] : memref<4x8x8xf32, #tpu.memory_space<vmem>>, vector<1x8x8xf32>
    %97 = vector.shape_cast %96 : vector<1x8x8xf32> to vector<8x8xf32>
    %98 = arith.addf %95, %97 : vector<8x8xf32>
    %cst_40 = arith.constant dense<0xFF800000> : vector<8xf32>
    %99 = vector.multi_reduction <maximumf>, %98, %cst_40 [1] : vector<8x8xf32> to vector<8xf32>
    %100 = vector.shape_cast %99 : vector<8xf32> to vector<8x1xf32>
    %101 = vector.broadcast %100 : vector<8x1xf32> to vector<8x8xf32>
    %102 = arith.subf %98, %101 : vector<8x8xf32>
    %103 = math.exp %102 : vector<8x8xf32>
    %cst_41 = arith.constant dense<0.000000e+00> : vector<8xf32>
    %104 = vector.multi_reduction <add>, %103, %cst_41 [1] : vector<8x8xf32> to vector<8xf32>
    %105 = vector.shape_cast %104 : vector<8xf32> to vector<8x1xf32>
    %106 = tpu.reciprocal %105 {approx = true} : vector<8x1xf32> -> vector<8x1xf32>
    %107 = vector.broadcast %106 : vector<8x1xf32> to vector<8x8xf32>
    %108 = arith.mulf %103, %107 : vector<8x8xf32>
    %109 = arith.truncf %108 : vector<8x8xf32> to vector<8x8xbf16>
    %cst_42 = arith.constant dense<0.000000e+00> : vector<8x32xf32>
    %110 = tpu.matmul %109, %94, %cst_42 {dimension_numbers = #tpu.dot_dimension_numbers<[1], [0], [0], [1], [0, 0, 1, 1], [], []>} : vector<8x8xbf16>, vector<8x32xbf16>, vector<8x32xf32> -> vector<8x32xf32>
    %111 = arith.truncf %110 : vector<8x32xf32> to vector<8x32xbf16>
    %c2_43 = arith.constant 2 : index
    %c0_44 = arith.constant 0 : index
    %c0_45 = arith.constant 0 : index
    %112 = vector.load %arg6[%c2_43, %c0_44, %c0_45] : memref<4x32x128xbf16, #tpu.memory_space<vmem>>, vector<1x32x128xbf16>
    %113 = vector.shape_cast %112 : vector<1x32x128xbf16> to vector<32x128xbf16>
    %cst_46 = arith.constant dense<0.000000e+00> : vector<8x128xf32>
    %114 = tpu.matmul %111, %113, %cst_46 {dimension_numbers = #tpu.dot_dimension_numbers<[1], [0], [0], [1], [0, 0, 1, 1], [], []>} : vector<8x32xbf16>, vector<32x128xbf16>, vector<8x128xf32> -> vector<8x128xf32>
    %115 = arith.addf %88, %114 : vector<8x128xf32>
    %116 = vector.extract_strided_slice %31 {offsets = [0, 96], sizes = [8, 32], strides = [1, 1]} : vector<8x128xf32> to vector<8x32xf32>
    %117 = arith.truncf %116 : vector<8x32xf32> to vector<8x32xbf16>
    %118 = vector.extract_strided_slice %32 {offsets = [0, 96], sizes = [8, 32], strides = [1, 1]} : vector<8x128xf32> to vector<8x32xf32>
    %119 = arith.truncf %118 : vector<8x32xf32> to vector<8x32xbf16>
    %120 = vector.extract_strided_slice %33 {offsets = [0, 96], sizes = [8, 32], strides = [1, 1]} : vector<8x128xf32> to vector<8x32xf32>
    %121 = arith.truncf %120 : vector<8x32xf32> to vector<8x32xbf16>
    "tpu.trace_start"() <{level = 10 : i32, message = "qd,kd->qk"}> : () -> ()
    %cst_47 = arith.constant dense<0.000000e+00> : vector<8x8xf32>
    %122 = tpu.matmul %117, %119, %cst_47 {dimension_numbers = #tpu.dot_dimension_numbers<[1], [1], [0], [0], [0, 0, 1, 0], [], []>} : vector<8x32xbf16>, vector<8x32xbf16>, vector<8x8xf32> -> vector<8x8xf32>
    "tpu.trace_stop"() : () -> ()
    %c3 = arith.constant 3 : index
    %c0_48 = arith.constant 0 : index
    %c0_49 = arith.constant 0 : index
    %123 = vector.load %arg8[%c3, %c0_48, %c0_49] : memref<4x8x8xf32, #tpu.memory_space<vmem>>, vector<1x8x8xf32>
    %124 = vector.shape_cast %123 : vector<1x8x8xf32> to vector<8x8xf32>
    %125 = arith.addf %122, %124 : vector<8x8xf32>
    %cst_50 = arith.constant dense<0xFF800000> : vector<8xf32>
    %126 = vector.multi_reduction <maximumf>, %125, %cst_50 [1] : vector<8x8xf32> to vector<8xf32>
    %127 = vector.shape_cast %126 : vector<8xf32> to vector<8x1xf32>
    %128 = vector.broadcast %127 : vector<8x1xf32> to vector<8x8xf32>
    %129 = arith.subf %125, %128 : vector<8x8xf32>
    %130 = math.exp %129 : vector<8x8xf32>
    %cst_51 = arith.constant dense<0.000000e+00> : vector<8xf32>
    %131 = vector.multi_reduction <add>, %130, %cst_51 [1] : vector<8x8xf32> to vector<8xf32>
    %132 = vector.shape_cast %131 : vector<8xf32> to vector<8x1xf32>
    %133 = tpu.reciprocal %132 {approx = true} : vector<8x1xf32> -> vector<8x1xf32>
    %134 = vector.broadcast %133 : vector<8x1xf32> to vector<8x8xf32>
    %135 = arith.mulf %130, %134 : vector<8x8xf32>
    %136 = arith.truncf %135 : vector<8x8xf32> to vector<8x8xbf16>
    %cst_52 = arith.constant dense<0.000000e+00> : vector<8x32xf32>
    %137 = tpu.matmul %136, %121, %cst_52 {dimension_numbers = #tpu.dot_dimension_numbers<[1], [0], [0], [1], [0, 0, 1, 1], [], []>} : vector<8x8xbf16>, vector<8x32xbf16>, vector<8x32xf32> -> vector<8x32xf32>
    %138 = arith.truncf %137 : vector<8x32xf32> to vector<8x32xbf16>
    %c3_53 = arith.constant 3 : index
    %c0_54 = arith.constant 0 : index
    %c0_55 = arith.constant 0 : index
    %139 = vector.load %arg6[%c3_53, %c0_54, %c0_55] : memref<4x32x128xbf16, #tpu.memory_space<vmem>>, vector<1x32x128xbf16>
    %140 = vector.shape_cast %139 : vector<1x32x128xbf16> to vector<32x128xbf16>
    %cst_56 = arith.constant dense<0.000000e+00> : vector<8x128xf32>
    %141 = tpu.matmul %138, %140, %cst_56 {dimension_numbers = #tpu.dot_dimension_numbers<[1], [0], [0], [1], [0, 0, 1, 1], [], []>} : vector<8x32xbf16>, vector<32x128xbf16>, vector<8x128xf32> -> vector<8x128xf32>
    %142 = arith.addf %115, %141 : vector<8x128xf32>
    %143 = arith.addf %1, %142 : vector<8x128xf32>
    %c0_57 = arith.constant 0 : index
    %c0_58 = arith.constant 0 : index
    %144 = vector.load %arg7[%c0_57, %c0_58] : memref<1x128xf32, #tpu.memory_space<vmem>>, vector<1x128xf32>
    %145 = vector.broadcast %144 : vector<1x128xf32> to vector<8x128xf32>
    %146 = arith.addf %143, %145 : vector<8x128xf32>
    %c0_59 = arith.constant 0 : index
    %c0_60 = arith.constant 0 : index
    %c0_61 = arith.constant 0 : index
    %147 = vector.load %arg9[%c0_59, %c0_60, %c0_61] : memref<1x8x128xf32, #tpu.memory_space<vmem>>, vector<1x8x128xf32>
    %148 = vector.shape_cast %147 : vector<1x8x128xf32> to vector<8x128xf32>
    %149 = vector.shape_cast %146 : vector<8x128xf32> to vector<1x8x128xf32>
    tpu.vector_store %arg9[%c0_59, %c0_60, %c0_61], %149 {strides = array<i32>} : memref<1x8x128xf32, #tpu.memory_space<vmem>>, vector<1x8x128xf32>,
    return
  }
  func.func @transform_0(%arg0: i32) -> (i32, i32, i32) {
    %c0_i32 = arith.constant 0 : i32
    %c0_i32_0 = arith.constant 0 : i32
    %c0_i32_1 = arith.constant 0 : i32
    return %arg0, %c0_i32, %c0_i32_0 : i32, i32, i32
  }
  func.func @transform_1(%arg0: i32) -> (i32, i32) {
    %c0_i32 = arith.constant 0 : i32
    %c0_i32_0 = arith.constant 0 : i32
    %c0_i32_1 = arith.constant 0 : i32
    return %c0_i32, %c0_i32_0 : i32, i32
  }
  func.func @transform_2(%arg0: i32) -> (i32, i32) {
    %c0_i32 = arith.constant 0 : i32
    %c0_i32_0 = arith.constant 0 : i32
    %c0_i32_1 = arith.constant 0 : i32
    return %c0_i32, %c0_i32_0 : i32, i32
  }
  func.func @transform_3(%arg0: i32) -> (i32, i32) {
    %c0_i32 = arith.constant 0 : i32
    %c0_i32_0 = arith.constant 0 : i32
    %c0_i32_1 = arith.constant 0 : i32
    return %c0_i32, %c0_i32_0 : i32, i32
  }
  func.func @transform_4(%arg0: i32) -> (i32, i32) {
    %c0_i32 = arith.constant 0 : i32
    %c0_i32_0 = arith.constant 0 : i32
    %c0_i32_1 = arith.constant 0 : i32
    return %c0_i32, %c0_i32_0 : i32, i32
  }
  func.func @transform_5(%arg0: i32) -> (i32, i32, i32) {
    %c0_i32 = arith.constant 0 : i32
    %c0_i32_0 = arith.constant 0 : i32
    %c0_i32_1 = arith.constant 0 : i32
    %c0_i32_2 = arith.constant 0 : i32
    return %c0_i32, %c0_i32_0, %c0_i32_1 : i32, i32, i32
  }
  func.func @transform_6(%arg0: i32) -> (i32, i32) {
    %c0_i32 = arith.constant 0 : i32
    %c0_i32_0 = arith.constant 0 : i32
    %c0_i32_1 = arith.constant 0 : i32
    return %c0_i32, %c0_i32_0 : i32, i32
  }
  func.func @transform_7(%arg0: i32) -> (i32, i32, i32) {
    %c0_i32 = arith.constant 0 : i32
    %c0_i32_0 = arith.constant 0 : i32
    %c0_i32_1 = arith.constant 0 : i32
    %c0_i32_2 = arith.constant 0 : i32
    return %c0_i32, %c0_i32_0, %c0_i32_1 : i32, i32, i32
  }
  func.func @transform_8(%arg0: i32) -> (i32, i32, i32) {
    %c0_i32 = arith.constant 0 : i32
    %c0_i32_0 = arith.constant 0 : i32
    %c0_i32_1 = arith.constant 0 : i32
    return %arg0, %c0_i32, %c0_i32_0 : i32, i32, i32
  }
}

</mosaic_0001>

<bundles_post_ra>
// kernel: tpu_custom_call.1
= control target key start
LH: loop header
LB: loop body
LE: loop exit
PB: predicated region body
PF: predicated region fallthrough
CT: control target
= control target key end

     0   :  { %s2059_s0 = inlined_call_operand.hbm [shape: f32[2,8,128], index: 0, kind: input, shape index: {}]   ;;  %s2060_s1 = inlined_call_operand.hbm [shape: f32[1,128], index: 1, kind: input, shape index: {}]   ;;  %s2061_s2 = inlined_call_operand.hbm [shape: f32[1,128], index: 2, kind: input, shape index: {}]   ;;  %s2062_s3 = inlined_call_operand.hbm [shape: bf16[128,384], index: 3, kind: input, shape index: {}]   ;;  %s2063_s4 = inlined_call_operand.vmem [shape: f32[1,384], index: 4, kind: input, shape index: {}]   ;;  %s2064_s5 = inlined_call_operand.hbm [shape: bf16[4,32,128], index: 5, kind: input, shape index: {}]   ;;  %s2065_s6 = inlined_call_operand.vmem [shape: f32[1,128], index: 6, kind: input, shape index: {}]   ;;  %s2066_s7 = inlined_call_operand.hbm [shape: f32[4,8,8], index: 7, kind: input, shape index: {}]   ;;  %s2067_s8 = inlined_call_operand.hbm [shape: f32[2,8,128], index: 8, kind: output, shape index: {}]  }
   0x1   :  { %2068 = sst [smem:[#allocation19_spill]] %s2060_s1 }
   0x2   :  { %2069 = sst [smem:[#allocation20_spill]] %s2061_s2 }
   0x3   :  { %13 = vsyncpa [#allocation3], 0 }
   0x4   :  { %15 = vsyncpa [#allocation3 + $0x1], 0 }
   0x5   :  { %16 = vsyncpa [#allocation6], 0 }
   0x6   :  { %17 = vsyncpa [#allocation9], 0 }
   0x7   :  { %18 = vsyncpa [#allocation12], 0 }
   0x8   :  { %19 = vsyncpa [#allocation4], 0 }
   0x9   :  { %21 = vsyncpa [#allocation4 + $0x1], 0  ;;  %s1823_s27 = smov 0   ;;  %s1825_s28 = smov 0  }
   0xa   :  { %s1827_s29 = smov 0   ;;  %s1829_s30 = smov 0  }
   0xb LB: > { %s2070_s1 = sld [smem:[#allocation19_spill]]  ;;  %s1847_s12 = sadd.s32 4294967295, %s1761_s30   ;;  %s1761_s30 = sphi %s1829_s30, %s2082_s30   ;;  %s1757_s29 = sphi %s1827_s29, %s2081_s29   ;;  %s1753_s28 = sphi %s1825_s28, %s2080_s28   ;;  %s1749_s27 = sphi %s1823_s27, %s2079_s27  }
   0xc   : > { %p1178_p0 = scmp.ge.s32.totalorder %s1761_s30, 1  ;;  %p48_p1 = scmp.eq.s32.totalorder %s1847_s12, 0 }
   0xd   : > { %p231_p2 = scmp.lt.s32.totalorder %s1761_s30, 3  ;;  %s1763_s14 = smov [#allocation5]  }
   0xe   : > { %s245_s15 = sshll.u32 %s1763_s14, 4  ;;  %s266_s18 = sshll.u32 %s2062_s3, 4  ;;  %s246_s15 = int_to_ptr.vmem [resolvable:$true] %s245_s15  ;;  %s267_s18 = int_to_ptr.hbm [resolvable:$true] %s266_s18 }
   0xf   : > { %p1852_p3 = pnand %p1178_p0, %p231_p2  ;;  %s1764_s20 = smov [#allocation8]  }
  0x10   : > { %s268_s21 = sshll.u32 %s1764_s20, 4  ;;  %s1765_s22 = smov 192   ;;  %s269_s21 = int_to_ptr.vmem [resolvable:$true] %s268_s21 }
  0x11   : > { %s243_s11 = sshll.u32 %s2070_s1, 4  ;;  %p1395_p5 = pneg %p1852_p3  ;;  %s244_s11 = int_to_ptr.hbm [resolvable:$true] %s243_s11 }
  0x12   : > { %s1766_s23 = smov 12   ;;  %s2073_s2 = sld [smem:[#allocation20_spill]] }
  0x13   : > { %p1864_p6 = pnand %p1395_p5, %p48_p1  ;;  %s1767_s9 = smov [#allocation7]  }
  0x14   : > { %s257_s10 = sshll.u32 %s1767_s9, 4  ;;  %s283_s17 = sshll.u32 %s2064_s5, 4  ;;  %s258_s10 = int_to_ptr.vmem [resolvable:$true] %s257_s10  ;;  %s284_s17 = int_to_ptr.hbm [resolvable:$true] %s283_s17 }
  0x15   : > { %1398 = dma.hbm_to_vmem [thread:$0]  (!%p1864_p6), %s244_s11, 16, %s246_s15, [#allocation6]  }
  0x16   : > { %1404 = dma.hbm_to_vmem [thread:$0]  (!%p1864_p6), %s267_s18, 3072, %s269_s21, [#allocation9], %s1765_s22, %s1765_s22, %s1766_s23  }
  0x17   : > { %s1768_s11 = smov [#allocation10]   ;;  %s1769_s18 = smov 64  }
  0x18   : > { %s255_s26 = sshll.u32 %s2073_s2, 4  ;;  %s285_s15 = sshll.u32 %s1768_s11, 4  ;;  %s256_s26 = int_to_ptr.hbm [resolvable:$true] %s255_s26  ;;  %s286_s15 = int_to_ptr.vmem [resolvable:$true] %s285_s15 }
  0x19   : > { %1401 = dma.hbm_to_vmem [thread:$0]  (!%p1864_p6), %s256_s26, 16, %s258_s10, [#allocation6]  }
  0x1a   : > { %s1770_s20 = smov 4   ;;  %s300_s23 = sshll.u32 %s2066_s7, 4  ;;  %s301_s23 = int_to_ptr.hbm [resolvable:$true] %s300_s23 }
  0x1b   : > { %1407 = dma.hbm_to_vmem [thread:$0]  (!%p1864_p6), %s284_s17, 1024, %s286_s15, [#allocation9], %s1769_s18, %s1769_s18, %s1770_s20  }
  0x1c   : > { %s1771_s24 = smov [#allocation11]   ;;  %s1772_s26 = smov 128  }
  0x1d   : > { %s302_s25 = sshll.u32 %s1771_s24, 4  ;;  %s1773_s9 = smov 8   ;;  %s303_s25 = int_to_ptr.vmem [resolvable:$true] %s302_s25 }
  0x1e   : > { %1410 = dma.hbm_to_vmem [thread:$0]  (!%p1864_p6), %s301_s23, 512, %s303_s25, [#allocation12], %s1772_s26, %s1772_s26, %s1773_s9  }
  0x1f   : > { %s1177_s10 = sadd.s32 4294967294, %s1761_s30   ;;  %s1889_s14 = sadd.s32 1, %s1761_s30  }
  0x20   : > { %s34_s16 = sadd.s32 1, %s1757_s29  ;;  %s31_s17 = ssub.s32 %s1761_s30, %s1889_s14 }
  0x21   : > { %p41_p7 = scmp.ne.s32.totalorder %s1757_s29, %s1753_s28  ;;  %p32_p8 = scmp.eq.s32.totalorder %s31_s17, 0 }
  0x22   : > { %p42_p9 = scmp.eq.s32.totalorder %s1761_s30, 0  ;;  %p47_p10 = scmp.ne.s32.totalorder %s1753_s28, %s1749_s27 }
  0x23   : > { %p218_p11 = scmp.eq.s32.totalorder %s1847_s12, 1  ;;  %p224_p0 = scmp.eq.s32.totalorder %s1177_s10, 1 }
  0x24   : > { %s1901_s11 = scalar_select %p32_p8, %s1757_s29, %s34_s16  }
  0x25   : > { %p1905_p12 = por %p48_p1, %p47_p10  ;;  %p1909_p13 = por %p218_p11, %p41_p7 }
  0x26   : > { %p43_p2 = por %p42_p9, %p41_p7  ;;  %s316_s18 = sand.u32 1, %s1757_s29  }
  0x27   : > { %p1914_p5 = por %p224_p0, %p47_p10  ;;  %p1424_p6 = scmp.lt.s32.totalorder %s1761_s30, 2 }
  0x28   : > { %s1185_s21 = sshll.u32 %s316_s18, 3  ;;  %s1186_s22 = sshll.u32 %s1761_s30, 3 }
  0x29   : > { %s324_s25 = scalar_lea.hbm %s2059_s0, %s1186_s22  ;;  %s320_s9 = scalar_lea.vmem [#allocation2], %s1185_s21 }
  0x2a   : > { %s326_s26 = sshll.u32 %s324_s25, 4  ;;  %s328_s16 = sshll.u32 %s320_s9, 4  ;;  %s327_s26 = int_to_ptr.hbm [resolvable:$true] %s326_s26  ;;  %s329_s16 = int_to_ptr.vmem [resolvable:$true] %s328_s16 }
  0x2b   : > { %p1923_p8 = pnand %p1424_p6, %p43_p2  ;;  %s317_s17 = scalar_lea.sflag [#allocation3], %s316_s18 }
  0x2c   : > { %s1653_s1 = sshra.s32 %s327_s26, 4  ;;  %s1660_s21 = scalar_lea.hbm %s2059_s0, 16  ;;  %s1654_s1 = int_to_ptr.hbm [resolvable:$true] %s1653_s1 }
  0x2d   : > { %s1655_s2 = scalar_lea.hbm %s1654_s1, 8  ;;  %p1657_p9 = pneg %p1923_p8 }
  0x2e   : > { %p1656_p7 = scmp.ne.s32.totalorder %s1654_s1, %s1655_s2  ;;  %p1661_p0 = scmp.lt.s32.totalorder %s1654_s1, %s2059_s0 }
  0x2f   : > { %p1662_p2 = scmp.lt.s32.totalorder %s1660_s21, %s1655_s2 }
  0x30   : > { %p1658_p10 = pnand %p1657_p9, %p1656_p7 }
  0x31   : > { %p1663_p6 = por %p1662_p2, %p1661_p0 }
  0x32   : > { %p1659_p11 = pneg %p1658_p10 }
  0x34   : > { %p1664_p4 = pnand %p1663_p6, %p1659_p11 }
  0x36   : > { %1667 = shalt.err (!%p1664_p4)
}
  0x37   : > { %1414 = dma.hbm_to_vmem [thread:$0]  (!%p1923_p8), %s327_s26, 128, %s329_s16, %s317_s17  }
  0x38   : > { %337 = sbr.rel (%p1852_p3) target bundleno = 1694 (0x69e), region = 52  ;;  %s1940_s18 = sand.u32 (!%p1852_p3), 1, %s1753_s28  }
  0x39   : > { %s1188_s9 = sshll.u32 (!%p1852_p3), %s1940_s18, 3  ;;  %s340_s22 = scalar_lea.sflag (!%p1852_p3), [#allocation3], %s1940_s18 }
  0x3a   : > { %s343_s1 = scalar_lea.vmem (!%p1852_p3), [#allocation2], %s1188_s9 }
  0x3d   : > { %1728 = dma.done.wait (%p1905_p12), %s340_s22, 128  }
  0x3e   : > { %1730 = vsyncadd (%p1905_p12), %s340_s22, 4294967168 }
  0x3f   : > { %1732 = dma.done.wait (%p48_p1), [#allocation6], 32  }
  0x40   : > { %1734 = vsyncadd (%p48_p1), [#allocation6], 4294967264 }
  0x41   : > { %1736 = dma.done.wait (%p48_p1), [#allocation9], 4096  }
  0x42   : > { %1738 = vsyncadd (%p48_p1), [#allocation9], 4294963200 }
  0x43   : > { %1740 = dma.done.wait (%p48_p1), [#allocation12], 512  }
  0x44   : > { %1742 = vsyncadd (%p48_p1), [#allocation12], 4294966784  ;;  %v1962_v0 = vld [vmem:[%s343_s1] sm:$0xff]  ;;  %v1774_v1 = vmov 128.0   ;;  %v1281_v12 = vld [vmem:[#allocation8 + $0xa8] sm:$0xf] }
  0x45   : > { %404 = vadd.xlane.f32.xlu0 %v1962_v0  ;;  %1481 = vrcp.f32 %v1774_v1  ;;  %v1361_v13 = vld [vmem:[#allocation8 + $0xb0] sm:$0xf0]  ;;  %v1360_v14 = vld [vmem:[#allocation8 + $0xac] sm:$0xf]  ;;  %v1283_v16 = vld [vmem:[#allocation8 + $0xb4] sm:$0xf0] }
  0x46   : > { %v1282_v15 = vor.u32 %v1361_v13, %v1281_v12  ;;  %v1289_v17 = vld [vmem:[#allocation8 + $0xb0] sm:$0xf]  ;;  %v1362_v18 = vld [vmem:[#allocation8 + $0xb8] sm:$0xf0]  ;;  %v1286_v19 = vor.u32 %v1360_v14, %v1283_v16  ;;  %v1357_v23 = vld [vmem:[#allocation8 + $0x94] sm:$0xf] }
  0x47   : > { %v1290_v20 = vor.u32 %v1362_v18, %v1289_v17  ;;  %v1269_v21 = vld [vmem:[#allocation8 + $0x90] sm:$0xf]  ;;  %v1358_v22 = vld [vmem:[#allocation8 + $0x98] sm:$0xf0]  ;;  %v1271_v25 = vld [vmem:[#allocation8 + $0x9c] sm:$0xf0] }
  0x48   : > { %626 = vmatpush.bf16.msra.mxu0 %v1282_v15  ;;  %639 = vmatpush.bf16.msra.mxu1 %v1286_v19  ;;  %v1270_v24 = vor.u32 %v1358_v22, %v1269_v21  ;;  %v1277_v26 = vld [vmem:[#allocation8 + $0x98] sm:$0xf]  ;;  %v1359_v27 = vld [vmem:[#allocation8 + $0xa0] sm:$0xf0]  ;;  %v1274_v28 = vor.u32 %v1357_v23, %v1271_v25  ;;  %v1354_v32 = vld [vmem:[#allocation8 + $0x7c] sm:$0xf] }
  0x49   : > { %652 = vmatpush.bf16.msra.mxu2 %v1290_v20  ;;  %v1278_v29 = vor.u32 %v1359_v27, %v1277_v26  ;;  %v1257_v30 = vld [vmem:[#allocation8 + $0x78] sm:$0xf]  ;;  %v1355_v31 = vld [vmem:[#allocation8 + $0x80] sm:$0xf0]  ;;  %v1259_v34 = vld [vmem:[#allocation8 + $0x84] sm:$0xf0] }
  0x4a   : > { %v1258_v33 = vor.u32 %v1355_v31, %v1257_v30  ;;  %v1265_v35 = vld [vmem:[#allocation8 + $0x80] sm:$0xf]  ;;  %v1356_v36 = vld [vmem:[#allocation8 + $0x88] sm:$0xf0]  ;;  %v1262_v37 = vor.u32 %v1354_v32, %v1259_v34  ;;  %v1351_v41 = vld [vmem:[#allocation8 + $0x64] sm:$0xf] }
  0x4b   : > { %v1482_v2 = vpop.eup %1481  ;;  %v1266_v38 = vor.u32 %v1356_v36, %v1265_v35  ;;  %v1245_v39 = vld [vmem:[#allocation8 + $0x60] sm:$0xf]  ;;  %v1352_v40 = vld [vmem:[#allocation8 + $0x68] sm:$0xf0]  ;;  %v1247_v42 = vld [vmem:[#allocation8 + $0x6c] sm:$0xf0] }
  0x4c   : > { %v407_v3 = vmul.f32 128.0, %v1482_v2  ;;  %vm411_vm0 = vweird.f32 %v1482_v2  ;;  %627 = vmatpush.bf16.msra.mxu0 %v1270_v24  ;;  %640 = vmatpush.bf16.msra.mxu1 %v1274_v28  ;;  %v1253_v43 = vld [vmem:[#allocation8 + $0x68] sm:$0xf]  ;;  %v1353_v44 = vld [vmem:[#allocation8 + $0x70] sm:$0xf0]  ;;  %v1246_v45 = vor.u32 %v1352_v40, %v1245_v39  ;;  %v1250_v46 = vor.u32 %v1351_v41, %v1247_v42  ;;  %s1775_s19 = smov 32  }
  0x4d   : > { %653 = vmatpush.bf16.msra.mxu2 %v1278_v29  ;;  %v1254_v47 = vor.u32 %v1353_v44, %v1253_v43  ;;  %v1233_v48 = vld [vmem:[#allocation8 + $0x48] sm:$0xf]  ;;  %v1349_v49 = vld [vmem:[#allocation8 + $0x50] sm:$0xf0]  ;;  %v1348_v50 = vld [vmem:[#allocation8 + $0x4c] sm:$0xf] }
  0x4e   : > { %v408_v4 = vsub.f32 1.0, %v407_v3  ;;  %v1235_v51 = vld [vmem:[#allocation8 + $0x54] sm:$0xf0]  ;;  %v1241_v52 = vld [vmem:[#allocation8 + $0x50] sm:$0xf]  ;;  %v1234_v54 = vor.u32 %v1349_v49, %v1233_v48  ;;  %vm669_vm7 = vcmask 261120  }
  0x4f   : > { %v1350_v53 = vld [vmem:[#allocation8 + $0x58] sm:$0xf0]  ;;  %v1238_v55 = vor.u32 %v1348_v50, %v1235_v51  ;;  %v1221_v57 = vld [vmem:[#allocation8 + $0x30] sm:$0xf]  ;;  %v1345_v59 = vld [vmem:[#allocation8 + $0x34] sm:$0xf] }
  0x50   : > { %v409_v5 = vmul.f32 %v1482_v2, %v408_v4  ;;  %628 = vmatpush.bf16.msra.mxu0 %v1258_v33  ;;  %641 = vmatpush.bf16.msra.mxu1 %v1262_v37  ;;  %v1242_v56 = vor.u32 %v1350_v53, %v1241_v52  ;;  %v1346_v58 = vld [vmem:[#allocation8 + $0x38] sm:$0xf0]  ;;  %v1223_v61 = vld [vmem:[#allocation8 + $0x3c] sm:$0xf0]  ;;  %v1229_v62 = vld [vmem:[#allocation8 + $0x38] sm:$0xf] }
  0x51   : > { %654 = vmatpush.bf16.msra.mxu2 %v1266_v38  ;;  %v1347_v63 = vld [vmem:[#allocation8 + $0x40] sm:$0xf0]  ;;  %v1226_v3 = vor.u32 %v1345_v59, %v1223_v61  ;;  %v1197_v15 = vld [vmem:[#allocation8] sm:$0xf]  ;;  %v1340_v16 = vld [vmem:[#allocation8 + $0x8] sm:$0xf0] }
  0x52   : > { %v410_v6 = vadd.f32 %v1482_v2, %v409_v5  ;;  %v1230_v4 = vor.u32 %v1347_v63, %v1229_v62  ;;  %v1209_v5 = vld [vmem:[#allocation8 + $0x18] sm:$0xf]  ;;  %v1339_v17 = vld [vmem:[#allocation8 + $0x4] sm:$0xf]  ;;  %v1199_v18 = vld [vmem:[#allocation8 + $0xc] sm:$0xf0]  ;;  %v1198_v23 = vor.u32 %v1340_v16, %v1197_v15 }
  0x53   : > { %v1205_v19 = vld [vmem:[#allocation8 + $0x8] sm:$0xf]  ;;  %v1341_v20 = vld [vmem:[#allocation8 + $0x10] sm:$0xf0]  ;;  %v1202_v24 = vor.u32 %v1339_v17, %v1199_v18  ;;  %v1478_v39 = vld [vmem:[#allocation5] ss:$0 sm:$0xff] }
  0x54   : > { %v412_v7 = vsel %vm411_vm0, %v1482_v2, %v410_v6  ;;  %629 = vmatpush.bf16.msra.mxu0 %v1246_v45  ;;  %642 = vmatpush.bf16.msra.mxu1 %v1250_v46  ;;  %v1222_v2 = vor.u32 %v1346_v58, %v1221_v57  ;;  %v1343_v6 = vld [vmem:[#allocation8 + $0x20] sm:$0xf0]  ;;  %v1206_v25 = vor.u32 %v1341_v20, %v1205_v19  ;;  %v1479_v46 = vld [vmem:[#allocation7] ss:$0 sm:$0xff]  ;;  %v490_v51 = vld [vmem:[%s2063_s4] sm:$0x7] }
  0x55   : > { %655 = vmatpush.bf16.msra.mxu2 %v1254_v47  ;;  %v1210_v12 = vor.u32 %v1343_v6, %v1209_v5  ;;  %v493_v52 = vperm.slane %v490_v51, 1  ;;  %v494_v57 = vperm.slane %v490_v51, 2  ;;  %s1776_s26 = smov 96   ;;  %vm705_vm8 = vcmask 1043456   ;;  %s1777_s16 = smov 64   ;;  %v1364_v5 = vld [vmem:[#allocation10 + $0x8] sm:$0xff] }
  0x56   : > { %v1363_v6 = vld [vmem:[#allocation10] sm:$0xff]  ;;  %vm689_vm9 = vcmask 64512   ;;  %s1336_s10 = sshll.u32 %s1847_s12, 3  ;;  %s401_s22 = scalar_lea.vmem [#allocation13], %s1188_s9 }
  0x57   : > { %s1054_s21 = scalar_lea.hbm %s2067_s8, %s1336_s10  ;;  %s1056_s1 = sshll.u32 %s401_s22, 4  ;;  %s1057_s1 = int_to_ptr.vmem [resolvable:$true] %s1056_s1 }
  0x58   : > { %630 = vmatpush.bf16.msra.mxu0 %v1234_v54  ;;  %643 = vmatpush.bf16.msra.mxu1 %v1238_v55  ;;  %s1058_s2 = sshll.u32 %s1054_s21, 4  ;;  %s1044_s12 = scalar_lea.sflag [#allocation4], %s1940_s18  ;;  %s1059_s2 = int_to_ptr.hbm [resolvable:$true] %s1058_s2 }
  0x59   : > { %656 = vmatpush.bf16.msra.mxu2 %v1242_v56  ;;  %s1697_s13 = sshra.s32 %s1059_s2, 4  ;;  %s1703_s9 = scalar_lea.hbm %s2067_s8, 16  ;;  %s1698_s13 = int_to_ptr.hbm [resolvable:$true] %s1697_s13 }
  0x5a   : > { %p1704_p12 = scmp.lt.s32.totalorder %s1698_s13, %s2067_s8 }
  0x5c   : > { %631 = vmatpush.bf16.msra.mxu0 %v1222_v2  ;;  %644 = vmatpush.bf16.msra.mxu1 %v1226_v3 }
  0x5d   : > { %657 = vmatpush.bf16.msra.mxu2 %v1230_v4 }
  0x60   : > { %632 = vmatpush.bf16.msra.mxu0 %v1210_v12  ;;  %v668_v12 = vld [vmem:[#allocation11] sm:$0xff] }
  0x64   : > { %633 = vmatpush.bf16.msra.mxu0 %v1198_v23 }
  0xb8   : > { %v405_v8 = vpop.xlane.xlu0 %404 }
  0xb9   : > { %v413_v9 = vmul.f32 %v412_v7, %v405_v8  ;;  %v1342_v7 = vld [vmem:[#allocation8 + $0x1c] sm:$0xf]  ;;  %v1211_v8 = vld [vmem:[#allocation8 + $0x24] sm:$0xf0] }
  0xba   : > { %v1214_v13 = vor.u32 %v1342_v7, %v1211_v8 }
  0xbb   : > { %v1966_v10 = vsub.f32 %v1962_v0, %v413_v9  ;;  %v1217_v9 = vld [vmem:[#allocation8 + $0x20] sm:$0xf] }
  0xbc   : > { %645 = vmatpush.bf16.msra.mxu1 %v1214_v13 }
  0xbd   : > { %v415_v11 = vmul.f32 %v1966_v10, %v1966_v10  ;;  %v450_v44 = vmul.f32 %v1478_v39, %v1966_v10  ;;  %v492_v10 = vperm.slane %v490_v51, 0  ;;  %v851_v39 = vld [vmem:[#allocation11 + $0x10] sm:$0xff]  ;;  %v944_v51 = vld [vmem:[#allocation11 + $0x18] sm:$0xff] }
  0xbf   : > { %416 = vadd.xlane.f32.xlu0 %v415_v11  ;;  %v1344_v11 = vld [vmem:[#allocation8 + $0x28] sm:$0xf0] }
  0xc0   : > { %v1218_v14 = vor.u32 %v1344_v11, %v1217_v9  ;;  %646 = vmatpush.bf16.msra.mxu1 %v1202_v24 }
  0xc2   : > { %658 = vmatpush.bf16.msra.mxu2 %v1218_v14 }
  0xc6   : > { %659 = vmatpush.bf16.msra.mxu2 %v1206_v25 }
  0xca   : > { %843 = vmatpush.bf16.msrb.mxu2 %v1364_v5 }
  0xce   : > { %844 = vmatpush.bf16.msrb.mxu2 %v1363_v6 }
 0x132   : > { %v417_v60 = vpop.xlane.xlu0 %416 }
 0x133   : > { %v418_v1 = vmul.f32 0.007874016, %v417_v60 }
 0x135   : > { %1483 = vrsqrt.f32 %v418_v1  ;;  %vm426_vm1 = vcmp.eq.f32.partialorder %v418_v1, inf  ;;  %v429_v31 = vand.u32 2147483648, %v418_v1  ;;  %vm428_vm2 = vcmp.eq.f32.partialorder %v418_v1, 0.0 }
 0x13b   : > { %v1484_v21 = vpop.eup %1483 }
 0x13c   : > { %v420_v22 = vmul.f32 %v1484_v21, %v418_v1 }
 0x13e   : > { %v421_v26 = vmul.f32 %v1484_v21, %v420_v22 }
 0x140   : > { %v422_v27 = vmul.f32 0.5, %v421_v26 }
 0x142   : > { %v423_v28 = vsub.f32 1.5, %v422_v27 }
 0x144   : > { %v424_v29 = vmul.f32 %v1484_v21, %v423_v28 }
 0x146   : > { %v425_v30 = vmul.f32 %v424_v29, %v418_v1 }
 0x148   : > { %v427_v32 = vsel %vm426_vm1, %v418_v1, %v425_v30 }
 0x149   : > { %v430_v33 = vsel %vm428_vm2, %v429_v31, %v427_v32 }
 0x14a   : > { %v431_v34 = vadd.f32 1e-06, %v430_v33 }
 0x14c   : > { %1485 = vrcp.f32 %v431_v34  ;;  %v443_v38 = vand.u32 2147483648, %v431_v34  ;;  %v441_v41 = vand.u32 2147483647, %v431_v34  ;;  %vm437_vm4 = vweird.f32 %v431_v34 }
 0x14e   : > { %v444_v43 = vor.u32 1.1754944e-38, %v443_v38  ;;  %vm442_vm6 = vcmp.eq.f32.partialorder %v441_v41, 8.507059e+37 }
 0x152   : > { %v1486_v35 = vpop.eup %1485 }
 0x153   : > { %v433_v36 = vmul.f32 %v1486_v35, %v431_v34  ;;  %vm438_vm3 = vweird.f32 %v1486_v35  ;;  %v728_v34 = vld [vmem:[#allocation11 + $0x8] sm:$0xff] }
 0x154   : > { %vm439_vm5 = vmor %vm437_vm4, %vm438_vm3 }
 0x155   : > { %v434_v37 = vsub.f32 1.0, %v433_v36 }
 0x157   : > { %v435_v40 = vmul.f32 %v1486_v35, %v434_v37 }
 0x159   : > { %v436_v42 = vadd.f32 %v1486_v35, %v435_v40 }
 0x15b   : > { %v440_v45 = vsel %vm439_vm5, %v1486_v35, %v436_v42 }
 0x15c   : > { %v445_v47 = vsel %vm442_vm6, %v444_v43, %v440_v45 }
 0x15d   : > { %v451_v48 = vmul.f32 %v450_v44, %v445_v47 }
 0x15f   : > { %v456_v49 = vadd.f32 %v1479_v46, %v451_v48 }
 0x161   : > { %v457_v50 = vpack.c.bf16 %v456_v49, %v456_v49 }
 0x163   : > { %634 = vmatmul.bf16.vlgmr.msra.gmra.mxu0 %v457_v50  ;;  %647 = vmatmul.bf16.vlgmr.msra.gmra.mxu1 %v457_v50 }
 0x164   : > { %660 = vmatmul.bf16.vlgmr.msra.gmra.mxu2 %v457_v50 }
 0x1e0   : > { %v635_v53 = vpop.f32.mrf.mxu0  ;;  %v648_v54 = vpop.f32.mrf.mxu1 }
 0x1e1   : > { %v649_v55 = vadd.f32 %v648_v54, %v493_v52  ;;  %v636_v59 = vadd.f32 %v635_v53, %v492_v10 }
 0x1e3   : > { %v666_v56 = vpack.c.bf16 %v649_v55, %v649_v55  ;;  %v665_v2 = vpack.c.bf16 %v636_v59, %v636_v59 }
 0x1e5   : > { %947 = vrot.lane.b32.xlu0 %v666_v56, %s1775_s19  ;;  %733 = vrot.lane.b32.xlu2 %v666_v56, %s1776_s26  ;;  %v674_v58 = vsel %vm669_vm7, %v666_v56, 0 }
 0x1e6   : > { %683 = vmatpush.bf16.xpose.msra.mxu3 %v674_v58 }
 0x1e7   : > { %v661_v60 = vpop.f32.mrf.mxu2 }
 0x1e8   : > { %v662_v61 = vadd.f32 %v661_v60, %v494_v57  ;;  %v637_v62 = vpop.f32.mrf.mxu0  ;;  %v650_v63 = vpop.f32.mrf.mxu1 }
 0x1ea   : > { %v1977_v1 = vpack.c.bf16 %v662_v61, %v662_v61 }
 0x1ec   : > { %v707_v3 = vsel %vm705_vm8, %v1977_v1, 0 }
 0x1ed   : > { %730 = vrot.lane.b32.xlu2 %v665_v2, %s1776_s26  ;;  %1291 = vmatmul.msk.bf16.vlgmr.msra.gmra.mxu3 %vm669_vm7, %v665_v2 }
 0x1ee   : > { %716 = vmatpush.bf16.msrb.mxu3 %v707_v3 }
 0x1ef   : > { %v663_v4 = vpop.f32.mrf.mxu2 }
 0x1f5   : > { %945 = vrot.lane.b32.xlu2 %v665_v2, %s1775_s19 }
 0x1fd   : > { %852 = vrot.lane.b32.xlu2 %v665_v2, %s1777_s16 }
 0x23f   : > { %v734_v7 = vpop.permute.xlu2 %733 }
 0x240   : > { %v739_v8 = vsel %vm669_vm7, %v734_v7, 0 }
 0x241   : > { %748 = vmatpush.bf16.xpose.msra.mxu3 %v739_v8 }
 0x247   : > { %v731_v26 = vpop.permute.xlu2 %730 }
 0x24f   : > { %v946_v29 = vpop.permute.xlu2 %945 }
 0x257   : > { %v948_v9 = vpop.permute.xlu0 %947  ;;  %v853_v30 = vpop.permute.xlu2 %852 }
 0x258   : > { %v953_v11 = vsel %vm669_vm7, %v948_v9, 0 }
 0x259   : > { %962 = vmatpush.bf16.xpose.msra.mxu2 %v953_v11 }
 0x270   : > { %v685_v13 = vpop.f32.mrf.mxu3 }
 0x271   : > { %v686_v14 = vadd.f32 %v685_v13, %v668_v12 }
 0x273   : > { %v690_v15 = vsel %vm689_vm9, %v686_v14, -inf }
 0x274   : > { %691 = vmax.xlane.f32.xlu1 %v690_v15 }
 0x278   : > { %v687_v16 = vpop.f32.mrf.mxu3 }
 0x279   : > { %v1366_v16 = vld [vmem:[#allocation10 + $0x18] sm:$0xff] }
 0x27a   : > { %815 = vmatpush.bf16.msrb.mxu1 %v1366_v16 }
 0x2e7   : > { %v692_v17 = vpop.xlane.xlu1 %691 }
 0x2e8   : > { %v693_v18 = vsub.f32 %v686_v14, %v692_v17  ;;  %v1365_v17 = vld [vmem:[#allocation10 + $0x10] sm:$0xff] }
 0x2e9   : > { %816 = vmatpush.bf16.msrb.mxu1 %v1365_v17 }
 0x2ea   : > { %v694_v19 = vmul.f32 1.442695, %v693_v18  ;;  %v1368_v18 = vld [vmem:[#allocation10 + $0x28] sm:$0xff] }
 0x2ec   : > { %1487 = vpow2.f32 %v694_v19 }
 0x2ed   : > { %935 = vmatpush.bf16.msra.mxu1 %v1368_v18 }
 0x2f2   : > { %v1488_v20 = vpop.eup %1487 }
 0x2f3   : > { %v696_v21 = vsel %vm689_vm9, %v1488_v20, 0.0 }
 0x2f4   : > { %697 = vadd.xlane.f32.xlu1 %v696_v21 }
 0x30d   : > { %854 = vrot.lane.b32.xlu1 %v666_v56, %s1777_s16 }
 0x367   : > { %v698_v22 = vpop.xlane.xlu1 %697 }
 0x368   : > { %1489 = vrcp.f32 %v698_v22 }
 0x36e   : > { %v1490_v23 = vpop.eup %1489 }
 0x36f   : > { %v700_v24 = vmul.f32 %v1490_v23, %v1488_v20  ;;  %v1367_v20 = vld [vmem:[#allocation10 + $0x20] sm:$0xff] }
 0x370   : > { %936 = vmatpush.bf16.msra.mxu1 %v1367_v20 }
 0x371   : > { %v701_v25 = vpack.c.bf16 %v700_v24, %v700_v24 }
 0x373   : > { %1292 = vmatmul.msk.bf16.vlgmr.msrb.gmra.mxu3 %vm689_vm9, %v701_v25 }
 0x37f   : > { %v855_v27 = vpop.permute.xlu1 %854 }
 0x380   : > { %v860_v28 = vsel %vm669_vm7, %v855_v27, 0 }
 0x381   : > { %869 = vmatpush.bf16.xpose.msrb.mxu3 %v860_v28 }
 0x383   : > { %1293 = vmatmul.msk.bf16.vlgmr.msra.gmra.mxu3 %vm669_vm7, %v731_v26 }
 0x393   : > { %1313 = vmatmul.msk.bf16.vlgmr.msrb.gmra.mxu3 %vm669_vm7, %v853_v30 }
 0x3f6   : > { %v718_v31 = vpop.f32.mrf.mxu3 }
 0x3f7   : > { %v722_v32 = vpack.c.bf16 %v718_v31, %v718_v31 }
 0x3f9   : > { %1312 = vmatmul.msk.bf16.vlgmr.msrb.gmra.mxu2 %vm669_vm7, %v722_v32  ;;  %v1369_v32 = vld [vmem:[#allocation10 + $0x30] sm:$0xff] }
 0x3fe   : > { %v720_v33 = vpop.f32.mrf.mxu3 }
 0x406   : > { %v750_v35 = vpop.f32.mrf.mxu3 }
 0x407   : > { %v751_v36 = vadd.f32 %v750_v35, %v728_v34 }
 0x409   : > { %1324 = vmatmul.msk.bf16.vlgmr.msra.gmra.mxu2 %vm669_vm7, %v946_v29  ;;  %v754_v37 = vsel %vm689_vm9, %v751_v36, -inf }
 0x40a   : > { %755 = vmax.xlane.f32.xlu2 %v754_v37 }
 0x40e   : > { %v752_v38 = vpop.f32.mrf.mxu3 }
 0x416   : > { %v871_v40 = vpop.f32.mrf.mxu3 }
 0x417   : > { %v872_v41 = vadd.f32 %v871_v40, %v851_v39 }
 0x419   : > { %v875_v42 = vsel %vm689_vm9, %v872_v41, -inf }
 0x41a   : > { %876 = vmax.xlane.f32.xlu1 %v875_v42 }
 0x41e   : > { %v873_v43 = vpop.f32.mrf.mxu3 }
 0x47c   : > { %v1998_v44 = vpop.f32.mrf.mxu2 }
 0x47d   : > { %v756_v45 = vpop.xlane.xlu2 %755 }
 0x47e   : > { %v757_v46 = vsub.f32 %v751_v36, %v756_v45  ;;  %v1480_v45 = vld [vmem:[%s2065_s6] ss:$0 sm:$0xff] }
 0x480   : > { %v758_v47 = vmul.f32 1.442695, %v757_v46 }
 0x482   : > { %1491 = vpow2.f32 %v758_v47 }
 0x484   : > { %v848_v48 = vpop.f32.mrf.mxu2 }
 0x488   : > { %v1492_v49 = vpop.eup %1491 }
 0x489   : > { %v760_v50 = vsel %vm689_vm9, %v1492_v49, 0.0 }
 0x48a   : > { %761 = vadd.xlane.f32.xlu2 %v760_v50 }
 0x48c   : > { %v964_v52 = vpop.f32.mrf.mxu2 }
 0x48d   : > { %v965_v53 = vadd.f32 %v964_v52, %v944_v51  ;;  %v877_v54 = vpop.xlane.xlu1 %876 }
 0x48e   : > { %v878_v55 = vsub.f32 %v872_v41, %v877_v54 }
 0x48f   : > { %v968_v10 = vsel %vm689_vm9, %v965_v53, -inf }
 0x490   : > { %v879_v56 = vmul.f32 1.442695, %v878_v55  ;;  %969 = vmax.xlane.f32.xlu0 %v968_v10 }
 0x492   : > { %1493 = vpow2.f32 %v879_v56 }
 0x494   : > { %v966_v57 = vpop.f32.mrf.mxu2 }
 0x498   : > { %v1494_v58 = vpop.eup %1493 }
 0x499   : > { %v881_v59 = vsel %vm689_vm9, %v1494_v58, 0.0 }
 0x49a   : > { %882 = vadd.xlane.f32.xlu1 %v881_v59 }
 0x4a4   : > { %767 = vrot.lane.b32.xlu0 %v1977_v1, %s1776_s26 }
 0x4b3   : > { %887 = vrot.lane.b32.xlu1 %v1977_v1, %s1777_s16 }
 0x4fd   : > { %v762_v63 = vpop.xlane.xlu2 %761 }
 0x503   : > { %v970_v60 = vpop.xlane.xlu0 %969 }
 0x504   : > { %v971_v61 = vsub.f32 %v965_v53, %v970_v60 }
 0x506   : > { %v972_v62 = vmul.f32 1.442695, %v971_v61 }
 0x508   : > { %1495 = vpow2.f32 %v972_v62 }
 0x509   : > { %1497 = vrcp.f32 %v762_v63 }
 0x50d   : > { %v883_v8 = vpop.xlane.xlu1 %882 }
 0x50e   : > { %v1496_v2 = vpop.eup %1495  ;;  %1499 = vrcp.f32 %v883_v8 }
 0x50f   : > { %v974_v3 = vsel %vm689_vm9, %v1496_v2, 0.0  ;;  %v1498_v4 = vpop.eup %1497 }
 0x510   : > { %975 = vadd.xlane.f32.xlu2 %v974_v3  ;;  %v764_v5 = vmul.f32 %v1498_v4, %v1492_v49 }
 0x512   : > { %v765_v9 = vpack.c.bf16 %v764_v5, %v764_v5 }
 0x514   : > { %v1500_v11 = vpop.eup %1499 }
 0x515   : > { %v885_v12 = vmul.f32 %v1500_v11, %v1494_v58 }
 0x516   : > { %v768_v6 = vpop.permute.xlu0 %767 }
 0x517   : > { %v773_v7 = vsel %vm705_vm8, %v768_v6, 0  ;;  %v886_v15 = vpack.c.bf16 %v885_v12, %v885_v12 }
 0x518   : > { %782 = vmatpush.bf16.msrb.mxu0 %v773_v7 }
 0x51b   : > { %1294 = vmatmul.msk.bf16.vlgmr.msrb.gmra.mxu0 %vm689_vm9, %v765_v9 }
 0x525   : > { %v888_v13 = vpop.permute.xlu1 %887 }
 0x526   : > { %v893_v14 = vsel %vm705_vm8, %v888_v13, 0 }
 0x527   : > { %902 = vmatpush.bf16.msra.mxu0 %v893_v14 }
 0x528   : > { %980 = vrot.lane.b32.xlu2 %v1977_v1, %s1775_s19  ;;  %v1370_v1 = vld [vmem:[#allocation10 + $0x38] sm:$0xff]  ;;  %s1699_s19 = scalar_lea.hbm %s1698_s13, 8 }
 0x529   : > { %p1700_p1 = scmp.ne.s32.totalorder %s1698_s13, %s1699_s19  ;;  %p1705_p8 = scmp.lt.s32.totalorder %s1703_s9, %s1699_s19 }
 0x52b   : > { %1314 = vmatmul.msk.bf16.vlgmr.msra.gmra.mxu0 %vm689_vm9, %v886_v15  ;;  %p1701_p3 = pnand %p1700_p1, %p1909_p13  ;;  %p1706_p7 = por %p1705_p8, %p1704_p12 }
 0x52c   : > { %1028 = vmatpush.bf16.msrb.mxu0 %v1370_v1 }
 0x52d   : > { %p1702_p4 = pneg %p1701_p3 }
 0x52f   : > { %p1707_p9 = pnand %p1706_p7, %p1702_p4 }
 0x530   : > { %1029 = vmatpush.bf16.msrb.mxu0 %v1369_v32 }
 0x583   : > { %v976_v19 = vpop.xlane.xlu2 %975 }
 0x584   : > { %1501 = vrcp.f32 %v976_v19 }
 0x58a   : > { %v1502_v21 = vpop.eup %1501 }
 0x58b   : > { %v978_v22 = vmul.f32 %v1502_v21, %v1496_v2  ;;  %v981_v23 = vpop.permute.xlu2 %980 }
 0x58c   : > { %v986_v24 = vsel %vm705_vm8, %v981_v23, 0 }
 0x58d   : > { %v979_v25 = vpack.c.bf16 %v978_v22, %v978_v22  ;;  %995 = vmatpush.bf16.msra.mxu3 %v986_v24 }
 0x590   : > { %1325 = vmatmul.msk.bf16.vlgmr.msra.gmra.mxu3 %vm689_vm9, %v979_v25 }
 0x598   : > { %v784_v26 = vpop.f32.mrf.mxu0 }
 0x599   : > { %v788_v27 = vpack.c.bf16 %v784_v26, %v784_v26 }
 0x59b   : > { %1303 = vmatmul.msk.bf16.vlgmr.msrb.gmra.mxu1 %vm669_vm7, %v788_v27 }
 0x5a0   : > { %v786_v28 = vpop.f32.mrf.mxu0 }
 0x5a8   : > { %v904_v29 = vpop.f32.mrf.mxu0 }
 0x5a9   : > { %v908_v30 = vpack.c.bf16 %v904_v29, %v904_v29 }
 0x5ab   : > { %1323 = vmatmul.msk.bf16.vlgmr.msra.gmra.mxu1 %vm669_vm7, %v908_v30 }
 0x5b0   : > { %v906_v31 = vpop.f32.mrf.mxu0 }
 0x613   : > { %v997_v33 = vpop.f32.mrf.mxu3 }
 0x614   : > { %v1001_v34 = vpack.c.bf16 %v997_v33, %v997_v33 }
 0x616   : > { %1334 = vmatmul.msk.bf16.vlgmr.msrb.gmra.mxu0 %vm669_vm7, %v1001_v34 }
 0x618   : > { %v818_v35 = vpop.f32.mrf.mxu1 }
 0x619   : > { %v847_v38 = vadd.f32 %v1998_v44, %v818_v35 }
 0x61b   : > { %v999_v36 = vpop.f32.mrf.mxu3 }
 0x620   : > { %v820_v37 = vpop.f32.mrf.mxu1 }
 0x628   : > { %v938_v39 = vpop.f32.mrf.mxu1 }
 0x629   : > { %v942_v40 = vadd.f32 %v938_v39, %v847_v38 }
 0x630   : > { %v940_v41 = vpop.f32.mrf.mxu1 }
 0x693   : > { %v1031_v42 = vpop.f32.mrf.mxu0 }
 0x694   : > { %v1035_v43 = vadd.f32 %v1031_v42, %v942_v40 }
 0x696   : > { %v1036_v44 = vadd.f32 %v1035_v43, %v1962_v0 }
 0x698   : > { %v1041_v46 = vadd.f32 %v1480_v45, %v1036_v44 }
 0x69a   : > { %1042 = vst [vmem:[%s401_s22] sm:$0xff] %v1041_v46 }
 0x69b   : > { %v1033_v47 = vpop.f32.mrf.mxu0 }
 0x69c   : > { %1710 = shalt.err (!%p1707_p9)
}
 0x69d   : > { %1393 = dma.vmem_to_hbm [thread:$0]  (%p1909_p13), %s1057_s1, 128, %s1059_s2, %s1044_s12  }
 0x69e PF: > { %s1070_s18 = sand.u32 1, %s1749_s27   ;;  %p2078_p10 = scmp.ge.s32.totalorder %s1761_s30, 2 }
 0x69f   : > { %s1071_s23 = scalar_lea.sflag [#allocation4], %s1070_s18 }
 0x6a0   : > { %p1416_p11 = pnand %p2078_p10, %p1914_p5 }
 0x6a2   : > { %p1417_p0 = pneg %p1416_p11 }
 0x6a4   : > { %1744 = dma.done.wait (%p1417_p0), %s1071_s23, 128  }
 0x6a5   : > { %1746 = vsyncadd (%p1417_p0), %s1071_s23, 4294967168  ;;  %p24_p2 = scmp.ge.s32.totalorder %s1889_s14, 4   ;;  %s2079_s27 = smov %s1753_s28 }
 0x6a6   : > { %s2080_s28 = smov %s1757_s29  ;;  %s2081_s29 = smov %s1901_s11 }
 0x6a7   : > { %s2082_s30 = smov %s1889_s14  ;;  %26 = sbr.rel (!%p24_p2) target bundleno = 11 (0xb), region = 123 }
 0x6ac   :  { %1077 = vsyncpa [#allocation3], 1 }
 0x6ad   :  { %1079 = vsyncpa [#allocation3 + $0x1], 1 }
 0x6ae   :  { %1080 = vsyncpa [#allocation6], 1 }
 0x6af   :  { %1081 = vsyncpa [#allocation9], 1 }
 0x6b0   :  { %1082 = vsyncpa [#allocation12], 1 }
 0x6b1   :  { %1083 = vsyncpa [#allocation4], 1 }
 0x6b2   :  { %1085 = vsyncpa [#allocation4 + $0x1], 1 }

</bundles_post_ra>
